<compile_context>
chip_gen: v7x
topology: tpu7x:2x2x1
jax: 0.10.0
libtpu: 0.0.40
codegen_flags: <defaults>
</compile_context>

<pallas_src>
import functools
import math

import jax
import jax.numpy as jnp
from jax.experimental import pallas as pl
from jax.experimental.pallas import tpu as pltpu


def _be_kernel(x_ref, u_ref, bias_ref, ln_ref, o_ref, *, B, D, Nb, G):
    # x_ref:    (Nb, B, D)   activations for Nb batch elements
    # u_ref:    (Nb, D, D)   per-batch ensemble weights
    # bias_ref: (Nb, B, D)   per-batch ensemble bias
    # ln_ref:   (4, D)       [g1, b1, g2, b2] layernorm affine params (shared)
    # o_ref:    (Nb, B*D)    lane-dense output slab
    eps = 1e-5

    x = x_ref[...].astype(jnp.float32)              # (Nb, B, D)
    ln = ln_ref[...].astype(jnp.float32)            # (4, D)
    g1, b1, g2, b2 = ln[0], ln[1], ln[2], ln[3]

    # LayerNorm 1 over the vocab (lane) dim.
    m1 = jnp.mean(x, axis=-1, keepdims=True)
    v1 = jnp.mean(jnp.square(x - m1), axis=-1, keepdims=True)
    xn = (x - m1) * jax.lax.rsqrt(v1 + eps) * g1 + b1      # (Nb, B, D)

    skip = xn

    # Ensemble dense: per-batch-element (B, D) @ (D, D) + bias.
    u = u_ref[...]                                         # (Nb, D, D)
    cdt = u.dtype                                          # bf16-capable weight stream

    if G > 1:
        # Pack G per-batch weights into one block-diagonal (Gi*D, Gi*D) MXU tile per
        # group; Nb (DMA blocking) can be large while each matmul stays ~128+ wide.
        acts = []
        for g0 in range(0, Nb, G):
            Gi = min(G, Nb - g0)
            rows = []
            for j in range(Gi):
                w = u[g0 + j]                              # (D, D)
                pieces = []
                if j > 0:
                    pieces.append(jnp.zeros((D, j * D), cdt))
                pieces.append(w)
                if j < Gi - 1:
                    pieces.append(jnp.zeros((D, (Gi - 1 - j) * D), cdt))
                rows.append(jnp.concatenate(pieces, axis=-1) if len(pieces) > 1 else w)
            u_bd = jnp.concatenate(rows, axis=0) if Gi > 1 else rows[0]   # (Gi*D, Gi*D)

            xg = [xn[g0 + j].astype(cdt) for j in range(Gi)]              # Gi x (B, D)
            x_flat = jnp.concatenate(xg, axis=-1) if Gi > 1 else xg[0]    # (B, Gi*D)

            a_flat = jnp.dot(x_flat, u_bd,
                             preferred_element_type=jnp.float32)          # (B, Gi*D)
            acts.extend(a_flat[:, j * D:(j + 1) * D] for j in range(Gi))
        act = jnp.stack(acts, axis=0)                                     # (Nb, B, D)
    else:
        act = jnp.einsum("nbd,nde->nbe", xn.astype(cdt), u,
                         preferred_element_type=jnp.float32)

    act = act + bias_ref[...].astype(jnp.float32)

    # LayerNorm 2 over the vocab dim.
    m2 = jnp.mean(act, axis=-1, keepdims=True)
    v2 = jnp.mean(jnp.square(act - m2), axis=-1, keepdims=True)
    an = (act - m2) * jax.lax.rsqrt(v2 + eps) * g2 + b2

    # Exact (erf-based) GELU, matching torch.nn.functional.gelu default.
    gelu = 0.5 * an * (1.0 + jax.lax.erf(an * (1.0 / math.sqrt(2.0))))

    out = (skip + gelu) * 0.5                              # (Nb, B, D)

    # Lane-dense store: pack (Nb, B, D) -> (Nb, B*D); slab[n, b*D + d] = out[n, b, d]
    # matches the module's row-major reshape to (N, 1, B*D).
    o_ref[...] = jnp.concatenate(
        [out[:, b, :] for b in range(B)], axis=-1).astype(o_ref.dtype)


def _pick_block_batch(N, max_nb=64):
    """Batch elements per grid step.  If Nb < N the output block (Nb, B*D) needs its
    sublane dim to be a multiple of 8; Nb == N is always legal."""
    if N <= max_nb:
        return N
    nb = (max_nb // 8) * 8
    while nb >= 8:
        if N % nb == 0:
            return nb
        nb -= 8
    return N  # TODO(synk): pad N in the wrapper instead of one giant step.


def be_layer_forward(x, U, bias, g1, b1, g2, b2, *,
                     batch_size, branch, vocab_dim, block_batch=None):
    """x: any shape reshapeable to (batch_size, branch, vocab_dim).
    Returns (batch_size, 1, branch * vocab_dim), matching the PyTorch module."""
    N, B, D = batch_size, branch, vocab_dim
    x3 = x.reshape(N, B, D)

    # Fold the 4 layernorm affine vectors into one array -> single DMA per step.
    ln_params = jnp.stack(
        [g1.reshape(D), b1.reshape(D), g2.reshape(D), b2.reshape(D)], axis=0)  # (4, D)

    Nb = _pick_block_batch(N) if block_batch is None else block_batch
    assert N % Nb == 0, (N, Nb)

    # MXU pack-group size: combine G per-batch (D, D) weights into one >=128-wide tile.
    G = 1 if D >= 128 else max(1, 128 // D)
    G = min(G, Nb)

    kernel = functools.partial(_be_kernel, B=B, D=D, Nb=Nb, G=G)

    out = pl.pallas_call(
        kernel,
        out_shape=jax.ShapeDtypeStruct((N, B * D), x3.dtype),
        grid_spec=pltpu.PrefetchScalarGridSpec(
            num_scalar_prefetch=0,
            grid=(N // Nb,),
            in_specs=[
                pl.BlockSpec((Nb, B, D), lambda n: (n, 0, 0)),   # x
                pl.BlockSpec((Nb, D, D), lambda n: (n, 0, 0)),   # U
                pl.BlockSpec((Nb, B, D), lambda n: (n, 0, 0)),   # bias
                pl.BlockSpec((4, D), lambda n: (0, 0)),          # folded LN params
            ],
            out_specs=pl.BlockSpec((Nb, B * D), lambda n: (n, 0)),
        ),
        compiler_params=pltpu.CompilerParams(
            dimension_semantics=("parallel",),
        ),
    )(x3, U, bias, ln_params)

    # (N, B*D) -> (N, 1, B*D): singleton-dim insert only, no data relayout.
    return out.reshape(N, 1, B * D)


def _reference(x, U, bias, g1, b1, g2, b2, *, batch_size, branch, vocab_dim):
    """Pure-JAX reference mirroring the PyTorch forward."""
    N, B, D = batch_size, branch, vocab_dim
    eps = 1e-5
    x = x.reshape(N, B, D).astype(jnp.float32)

    def ln(v, g, b):
        m = jnp.mean(v, axis=-1, keepdims=True)
        var = jnp.mean((v - m) ** 2, axis=-1, keepdims=True)
        return (v - m) / jnp.sqrt(var + eps) * g + b

    xn = ln(x, g1, b1)
    skip = xn
    act = jnp.einsum("nbd,nde->nbe", xn, U.astype(jnp.float32)) + bias
    an = ln(act, g2, b2)
    gelu = 0.5 * an * (1.0 + jax.lax.erf(an / jnp.sqrt(2.0)))
    out = (skip + gelu) / 2.0
    return out.reshape(N, 1, B * D)


if __name__ == "__main__":
    # Module hyperparameters (small, consistent with the forward's reshape logic)
    batch_size = 4     # N in dense_baens
    branch = 8         # B
    vocab_dim = 32     # D1 == D2

    key = jax.random.PRNGKey(0)
    kx, ku, kb = jax.random.split(key, 3)

    # Input: anything that reshapes to (batch_size, branch, vocab_dim)
    x = jax.random.normal(kx, (batch_size, branch, vocab_dim), dtype=jnp.float32)

    # dense_baens params: U ~ N(0, 0.01), bias ~ N(0, 0.01)
    U = 0.01 * jax.random.normal(ku, (batch_size, vocab_dim, vocab_dim), dtype=jnp.float32)
    bias = 0.01 * jax.random.normal(kb, (batch_size, branch, vocab_dim), dtype=jnp.float32)

    # LayerNorm affine params (PyTorch default init: weight=1, bias=0)
    g1 = jnp.ones((vocab_dim,), dtype=jnp.float32)
    b1 = jnp.zeros((vocab_dim,), dtype=jnp.float32)
    g2 = jnp.ones((vocab_dim,), dtype=jnp.float32)
    b2 = jnp.zeros((vocab_dim,), dtype=jnp.float32)

    out = be_layer_forward(
        x, U, bias, g1, b1, g2, b2,
        batch_size=batch_size, branch=branch, vocab_dim=vocab_dim,
    )
    out = jax.block_until_ready(out)

    ref = _reference(
        x, U, bias, g1, b1, g2, b2,
        batch_size=batch_size, branch=branch, vocab_dim=vocab_dim,
    )
    assert out.shape == (batch_size, 1, branch * vocab_dim), out.shape
    assert jnp.allclose(out, ref, atol=1e-5, rtol=1e-5), float(jnp.max(jnp.abs(out - ref)))

    print("KERNEL_OK")
</pallas_src>

<mosaic_0001>
module attributes {stable_mosaic.version = 11 : i64} {
  func.func @_be_kernel(%arg0: i32, %arg1: memref<4x8x32xf32, #tpu.memory_space<vmem>>, %arg2: memref<4x32x32xf32, #tpu.memory_space<vmem>>, %arg3: memref<4x8x32xf32, #tpu.memory_space<vmem>>, %arg4: memref<4x32xf32, #tpu.memory_space<vmem>>, %arg5: memref<4x256xf32, #tpu.memory_space<vmem>>) attributes {dimension_semantics = [#tpu.dimension_semantics<parallel>], iteration_bounds = array<i64: 1>, scalar_prefetch = 0 : i64, scratch_operands = 0 : i64, tpu.core_type = #tpu.core_type<tc>, window_params = [{transform_indices = @transform_0, window_bounds = array<i64: 4, 8, 32>}, {transform_indices = @transform_1, window_bounds = array<i64: 4, 32, 32>}, {transform_indices = @transform_2, window_bounds = array<i64: 4, 8, 32>}, {pipeline_mode = #tpu.pipeline_mode<synchronous>, transform_indices = @transform_3, window_bounds = array<i64: 4, 32>}, {transform_indices = @transform_4, window_bounds = array<i64: 4, 256>}]} {
    %c0 = arith.constant 0 : index
    %c0_0 = arith.constant 0 : index
    %c0_1 = arith.constant 0 : index
    %0 = vector.load %arg1[%c0, %c0_0, %c0_1] : memref<4x8x32xf32, #tpu.memory_space<vmem>>, vector<4x8x32xf32>
    %c0_2 = arith.constant 0 : index
    %c0_3 = arith.constant 0 : index
    %1 = vector.load %arg4[%c0_2, %c0_3] : memref<4x32xf32, #tpu.memory_space<vmem>>, vector<4x32xf32>
    %2 = vector.extract_strided_slice %1 {offsets = [0, 0], sizes = [1, 32], strides = [1, 1]} : vector<4x32xf32> to vector<1x32xf32>
    %3 = vector.shape_cast %2 : vector<1x32xf32> to vector<32xf32>
    %4 = vector.extract_strided_slice %1 {offsets = [1, 0], sizes = [1, 32], strides = [1, 1]} : vector<4x32xf32> to vector<1x32xf32>
    %5 = vector.shape_cast %4 : vector<1x32xf32> to vector<32xf32>
    %6 = vector.extract_strided_slice %1 {offsets = [2, 0], sizes = [1, 32], strides = [1, 1]} : vector<4x32xf32> to vector<1x32xf32>
    %7 = vector.shape_cast %6 : vector<1x32xf32> to vector<32xf32>
    %8 = vector.extract_strided_slice %1 {offsets = [3, 0], sizes = [1, 32], strides = [1, 1]} : vector<4x32xf32> to vector<1x32xf32>
    %9 = vector.shape_cast %8 : vector<1x32xf32> to vector<32xf32>
    %cst = arith.constant dense<0.000000e+00> : vector<4x8xf32>
    %10 = vector.multi_reduction <add>, %0, %cst [2] : vector<4x8x32xf32> to vector<4x8xf32>
    %11 = vector.shape_cast %10 : vector<4x8xf32> to vector<4x8x1xf32>
    %cst_4 = arith.constant 3.200000e+01 : f32
    %12 = vector.broadcast %cst_4 : f32 to vector<4x8x1xf32>
    %13 = arith.divf %11, %12 : vector<4x8x1xf32>
    %14 = vector.broadcast %13 : vector<4x8x1xf32> to vector<4x8x32xf32>
    %15 = arith.subf %0, %14 : vector<4x8x32xf32>
    %16 = arith.mulf %15, %15 : vector<4x8x32xf32>
    %cst_5 = arith.constant dense<0.000000e+00> : vector<4x8xf32>
    %17 = vector.multi_reduction <add>, %16, %cst_5 [2] : vector<4x8x32xf32> to vector<4x8xf32>
    %18 = vector.shape_cast %17 : vector<4x8xf32> to vector<4x8x1xf32>
    %cst_6 = arith.constant 3.200000e+01 : f32
    %19 = vector.broadcast %cst_6 : f32 to vector<4x8x1xf32>
    %20 = arith.divf %18, %19 : vector<4x8x1xf32>
    %21 = vector.broadcast %13 : vector<4x8x1xf32> to vector<4x8x32xf32>
    %22 = arith.subf %0, %21 : vector<4x8x32xf32>
    %cst_7 = arith.constant 9.99999974E-6 : f32
    %23 = vector.broadcast %cst_7 : f32 to vector<4x8x1xf32>
    %24 = arith.addf %20, %23 : vector<4x8x1xf32>
    %25 = math.rsqrt %24 : vector<4x8x1xf32>
    %26 = vector.broadcast %25 : vector<4x8x1xf32> to vector<4x8x32xf32>
    %27 = arith.mulf %22, %26 : vector<4x8x32xf32>
    %28 = vector.shape_cast %3 : vector<32xf32> to vector<1x1x32xf32>
    %29 = vector.broadcast %28 : vector<1x1x32xf32> to vector<4x8x32xf32>
    %30 = arith.mulf %27, %29 : vector<4x8x32xf32>
    %31 = vector.shape_cast %5 : vector<32xf32> to vector<1x1x32xf32>
    %32 = vector.broadcast %31 : vector<1x1x32xf32> to vector<4x8x32xf32>
    %33 = arith.addf %30, %32 : vector<4x8x32xf32>
    %c0_8 = arith.constant 0 : index
    %c0_9 = arith.constant 0 : index
    %c0_10 = arith.constant 0 : index
    %34 = vector.load %arg2[%c0_8, %c0_9, %c0_10] : memref<4x32x32xf32, #tpu.memory_space<vmem>>, vector<4x32x32xf32>
    %35 = vector.extract_strided_slice %34 {offsets = [0, 0, 0], sizes = [1, 32, 32], strides = [1, 1, 1]} : vector<4x32x32xf32> to vector<1x32x32xf32>
    %36 = vector.shape_cast %35 : vector<1x32x32xf32> to vector<32x32xf32>
    %cst_11 = arith.constant 0.000000e+00 : f32
    %37 = vector.broadcast %cst_11 : f32 to vector<32x96xf32>
    %38 = tpu.concatenate %36, %37 in 1 : vector<32x32xf32>, vector<32x96xf32> -> vector<32x128xf32>
    %39 = vector.extract_strided_slice %34 {offsets = [1, 0, 0], sizes = [1, 32, 32], strides = [1, 1, 1]} : vector<4x32x32xf32> to vector<1x32x32xf32>
    %40 = vector.shape_cast %39 : vector<1x32x32xf32> to vector<32x32xf32>
    %cst_12 = arith.constant 0.000000e+00 : f32
    %41 = vector.broadcast %cst_12 : f32 to vector<32x32xf32>
    %cst_13 = arith.constant 0.000000e+00 : f32
    %42 = vector.broadcast %cst_13 : f32 to vector<32x64xf32>
    %43 = tpu.concatenate %41, %40, %42 in 1 : vector<32x32xf32>, vector<32x32xf32>, vector<32x64xf32> -> vector<32x128xf32>
    %44 = vector.extract_strided_slice %34 {offsets = [2, 0, 0], sizes = [1, 32, 32], strides = [1, 1, 1]} : vector<4x32x32xf32> to vector<1x32x32xf32>
    %45 = vector.shape_cast %44 : vector<1x32x32xf32> to vector<32x32xf32>
    %cst_14 = arith.constant 0.000000e+00 : f32
    %46 = vector.broadcast %cst_14 : f32 to vector<32x64xf32>
    %cst_15 = arith.constant 0.000000e+00 : f32
    %47 = vector.broadcast %cst_15 : f32 to vector<32x32xf32>
    %48 = tpu.concatenate %46, %45, %47 in 1 : vector<32x64xf32>, vector<32x32xf32>, vector<32x32xf32> -> vector<32x128xf32>
    %49 = vector.extract_strided_slice %34 {offsets = [3, 0, 0], sizes = [1, 32, 32], strides = [1, 1, 1]} : vector<4x32x32xf32> to vector<1x32x32xf32>
    %50 = vector.shape_cast %49 : vector<1x32x32xf32> to vector<32x32xf32>
    %cst_16 = arith.constant 0.000000e+00 : f32
    %51 = vector.broadcast %cst_16 : f32 to vector<32x96xf32>
    %52 = tpu.concatenate %51, %50 in 1 : vector<32x96xf32>, vector<32x32xf32> -> vector<32x128xf32>
    %53 = tpu.concatenate %38, %43, %48, %52 in 0 : vector<32x128xf32>, vector<32x128xf32>, vector<32x128xf32>, vector<32x128xf32> -> vector<128x128xf32>
    %54 = vector.extract_strided_slice %33 {offsets = [0, 0, 0], sizes = [1, 8, 32], strides = [1, 1, 1]} : vector<4x8x32xf32> to vector<1x8x32xf32>
    %55 = vector.shape_cast %54 : vector<1x8x32xf32> to vector<8x32xf32>
    %56 = vector.extract_strided_slice %33 {offsets = [1, 0, 0], sizes = [1, 8, 32], strides = [1, 1, 1]} : vector<4x8x32xf32> to vector<1x8x32xf32>
    %57 = vector.shape_cast %56 : vector<1x8x32xf32> to vector<8x32xf32>
    %58 = vector.extract_strided_slice %33 {offsets = [2, 0, 0], sizes = [1, 8, 32], strides = [1, 1, 1]} : vector<4x8x32xf32> to vector<1x8x32xf32>
    %59 = vector.shape_cast %58 : vector<1x8x32xf32> to vector<8x32xf32>
    %60 = vector.extract_strided_slice %33 {offsets = [3, 0, 0], sizes = [1, 8, 32], strides = [1, 1, 1]} : vector<4x8x32xf32> to vector<1x8x32xf32>
    %61 = vector.shape_cast %60 : vector<1x8x32xf32> to vector<8x32xf32>
    %62 = tpu.concatenate %55, %57, %59, %61 in 1 : vector<8x32xf32>, vector<8x32xf32>, vector<8x32xf32>, vector<8x32xf32> -> vector<8x128xf32>
    %cst_17 = arith.constant dense<0.000000e+00> : vector<8x128xf32>
    %63 = tpu.matmul %62, %53, %cst_17 {dimension_numbers = #tpu.dot_dimension_numbers<[1], [0], [0], [1], [0, 0, 1, 1], [], []>} : vector<8x128xf32>, vector<128x128xf32>, vector<8x128xf32> -> vector<8x128xf32>
    %64 = vector.extract_strided_slice %63 {offsets = [0, 0], sizes = [8, 32], strides = [1, 1]} : vector<8x128xf32> to vector<8x32xf32>
    %65 = vector.extract_strided_slice %63 {offsets = [0, 32], sizes = [8, 32], strides = [1, 1]} : vector<8x128xf32> to vector<8x32xf32>
    %66 = vector.extract_strided_slice %63 {offsets = [0, 64], sizes = [8, 32], strides = [1, 1]} : vector<8x128xf32> to vector<8x32xf32>
    %67 = vector.extract_strided_slice %63 {offsets = [0, 96], sizes = [8, 32], strides = [1, 1]} : vector<8x128xf32> to vector<8x32xf32>
    %68 = vector.shape_cast %64 : vector<8x32xf32> to vector<1x8x32xf32>
    %69 = vector.shape_cast %65 : vector<8x32xf32> to vector<1x8x32xf32>
    %70 = vector.shape_cast %66 : vector<8x32xf32> to vector<1x8x32xf32>
    %71 = vector.shape_cast %67 : vector<8x32xf32> to vector<1x8x32xf32>
    %72 = tpu.concatenate %68, %69, %70, %71 in 0 : vector<1x8x32xf32>, vector<1x8x32xf32>, vector<1x8x32xf32>, vector<1x8x32xf32> -> vector<4x8x32xf32>
    %c0_18 = arith.constant 0 : index
    %c0_19 = arith.constant 0 : index
    %c0_20 = arith.constant 0 : index
    %73 = vector.load %arg3[%c0_18, %c0_19, %c0_20] : memref<4x8x32xf32, #tpu.memory_space<vmem>>, vector<4x8x32xf32>
    %74 = arith.addf %72, %73 : vector<4x8x32xf32>
    %cst_21 = arith.constant dense<0.000000e+00> : vector<4x8xf32>
    %75 = vector.multi_reduction <add>, %74, %cst_21 [2] : vector<4x8x32xf32> to vector<4x8xf32>
    %76 = vector.shape_cast %75 : vector<4x8xf32> to vector<4x8x1xf32>
    %cst_22 = arith.constant 3.200000e+01 : f32
    %77 = vector.broadcast %cst_22 : f32 to vector<4x8x1xf32>
    %78 = arith.divf %76, %77 : vector<4x8x1xf32>
    %79 = vector.broadcast %78 : vector<4x8x1xf32> to vector<4x8x32xf32>
    %80 = arith.subf %74, %79 : vector<4x8x32xf32>
    %81 = arith.mulf %80, %80 : vector<4x8x32xf32>
    %cst_23 = arith.constant dense<0.000000e+00> : vector<4x8xf32>
    %82 = vector.multi_reduction <add>, %81, %cst_23 [2] : vector<4x8x32xf32> to vector<4x8xf32>
    %83 = vector.shape_cast %82 : vector<4x8xf32> to vector<4x8x1xf32>
    %cst_24 = arith.constant 3.200000e+01 : f32
    %84 = vector.broadcast %cst_24 : f32 to vector<4x8x1xf32>
    %85 = arith.divf %83, %84 : vector<4x8x1xf32>
    %86 = vector.broadcast %78 : vector<4x8x1xf32> to vector<4x8x32xf32>
    %87 = arith.subf %74, %86 : vector<4x8x32xf32>
    %cst_25 = arith.constant 9.99999974E-6 : f32
    %88 = vector.broadcast %cst_25 : f32 to vector<4x8x1xf32>
    %89 = arith.addf %85, %88 : vector<4x8x1xf32>
    %90 = math.rsqrt %89 : vector<4x8x1xf32>
    %91 = vector.broadcast %90 : vector<4x8x1xf32> to vector<4x8x32xf32>
    %92 = arith.mulf %87, %91 : vector<4x8x32xf32>
    %93 = vector.shape_cast %7 : vector<32xf32> to vector<1x1x32xf32>
    %94 = vector.broadcast %93 : vector<1x1x32xf32> to vector<4x8x32xf32>
    %95 = arith.mulf %92, %94 : vector<4x8x32xf32>
    %96 = vector.shape_cast %9 : vector<32xf32> to vector<1x1x32xf32>
    %97 = vector.broadcast %96 : vector<1x1x32xf32> to vector<4x8x32xf32>
    %98 = arith.addf %95, %97 : vector<4x8x32xf32>
    %cst_26 = arith.constant 5.000000e-01 : f32
    %99 = vector.broadcast %cst_26 : f32 to vector<4x8x32xf32>
    %100 = arith.mulf %99, %98 : vector<4x8x32xf32>
    %cst_27 = arith.constant 0.707106769 : f32
    %101 = vector.broadcast %cst_27 : f32 to vector<4x8x32xf32>
    %102 = arith.mulf %98, %101 : vector<4x8x32xf32>
    %103 = math.erf %102 : vector<4x8x32xf32>
    %cst_28 = arith.constant 1.000000e+00 : f32
    %104 = vector.broadcast %cst_28 : f32 to vector<4x8x32xf32>
    %105 = arith.addf %104, %103 : vector<4x8x32xf32>
    %106 = arith.mulf %100, %105 : vector<4x8x32xf32>
    %107 = arith.addf %33, %106 : vector<4x8x32xf32>
    %cst_29 = arith.constant 5.000000e-01 : f32
    %108 = vector.broadcast %cst_29 : f32 to vector<4x8x32xf32>
    %109 = arith.mulf %107, %108 : vector<4x8x32xf32>
    %110 = vector.extract_strided_slice %109 {offsets = [0, 0, 0], sizes = [4, 1, 32], strides = [1, 1, 1]} : vector<4x8x32xf32> to vector<4x1x32xf32>
    %111 = vector.shape_cast %110 : vector<4x1x32xf32> to vector<4x32xf32>
    %112 = vector.extract_strided_slice %109 {offsets = [0, 1, 0], sizes = [4, 1, 32], strides = [1, 1, 1]} : vector<4x8x32xf32> to vector<4x1x32xf32>
    %113 = vector.shape_cast %112 : vector<4x1x32xf32> to vector<4x32xf32>
    %114 = vector.extract_strided_slice %109 {offsets = [0, 2, 0], sizes = [4, 1, 32], strides = [1, 1, 1]} : vector<4x8x32xf32> to vector<4x1x32xf32>
    %115 = vector.shape_cast %114 : vector<4x1x32xf32> to vector<4x32xf32>
    %116 = vector.extract_strided_slice %109 {offsets = [0, 3, 0], sizes = [4, 1, 32], strides = [1, 1, 1]} : vector<4x8x32xf32> to vector<4x1x32xf32>
    %117 = vector.shape_cast %116 : vector<4x1x32xf32> to vector<4x32xf32>
    %118 = vector.extract_strided_slice %109 {offsets = [0, 4, 0], sizes = [4, 1, 32], strides = [1, 1, 1]} : vector<4x8x32xf32> to vector<4x1x32xf32>
    %119 = vector.shape_cast %118 : vector<4x1x32xf32> to vector<4x32xf32>
    %120 = vector.extract_strided_slice %109 {offsets = [0, 5, 0], sizes = [4, 1, 32], strides = [1, 1, 1]} : vector<4x8x32xf32> to vector<4x1x32xf32>
    %121 = vector.shape_cast %120 : vector<4x1x32xf32> to vector<4x32xf32>
    %122 = vector.extract_strided_slice %109 {offsets = [0, 6, 0], sizes = [4, 1, 32], strides = [1, 1, 1]} : vector<4x8x32xf32> to vector<4x1x32xf32>
    %123 = vector.shape_cast %122 : vector<4x1x32xf32> to vector<4x32xf32>
    %124 = vector.extract_strided_slice %109 {offsets = [0, 7, 0], sizes = [4, 1, 32], strides = [1, 1, 1]} : vector<4x8x32xf32> to vector<4x1x32xf32>
    %125 = vector.shape_cast %124 : vector<4x1x32xf32> to vector<4x32xf32>
    %126 = tpu.concatenate %111, %113, %115, %117, %119, %121, %123, %125 in 1 : vector<4x32xf32>, vector<4x32xf32>, vector<4x32xf32>, vector<4x32xf32>, vector<4x32xf32>, vector<4x32xf32>, vector<4x32xf32>, vector<4x32xf32> -> vector<4x256xf32>
    %c0_30 = arith.constant 0 : index
    %c0_31 = arith.constant 0 : index
    %127 = vector.load %arg5[%c0_30, %c0_31] : memref<4x256xf32, #tpu.memory_space<vmem>>, vector<4x256xf32>
    tpu.vector_store %arg5[%c0_30, %c0_31], %126 {strides = array<i32>} : memref<4x256xf32, #tpu.memory_space<vmem>>, vector<4x256xf32>,
    return
  }
  func.func @transform_0(%arg0: i32) -> (i32, i32, i32) {
    %c0_i32 = arith.constant 0 : i32
    %c0_i32_0 = arith.constant 0 : i32
    %c0_i32_1 = arith.constant 0 : i32
    return %arg0, %c0_i32, %c0_i32_0 : i32, i32, i32
  }
  func.func @transform_1(%arg0: i32) -> (i32, i32, i32) {
    %c0_i32 = arith.constant 0 : i32
    %c0_i32_0 = arith.constant 0 : i32
    %c0_i32_1 = arith.constant 0 : i32
    return %arg0, %c0_i32, %c0_i32_0 : i32, i32, i32
  }
  func.func @transform_2(%arg0: i32) -> (i32, i32, i32) {
    %c0_i32 = arith.constant 0 : i32
    %c0_i32_0 = arith.constant 0 : i32
    %c0_i32_1 = arith.constant 0 : i32
    return %arg0, %c0_i32, %c0_i32_0 : i32, i32, i32
  }
  func.func @transform_3(%arg0: i32) -> (i32, i32) {
    %c0_i32 = arith.constant 0 : i32
    %c0_i32_0 = arith.constant 0 : i32
    %c0_i32_1 = arith.constant 0 : i32
    return %c0_i32, %c0_i32_0 : i32, i32
  }
  func.func @transform_4(%arg0: i32) -> (i32, i32) {
    %c0_i32 = arith.constant 0 : i32
    %c0_i32_0 = arith.constant 0 : i32
    return %arg0, %c0_i32 : i32, i32
  }
}

</mosaic_0001>

<bundles_post_ra>
// kernel: tpu_custom_call.1
= control target key start
LH: loop header
LB: loop body
LE: loop exit
PB: predicated region body
PF: predicated region fallthrough
CT: control target
= control target key end

     0   :  { %9 = vsyncpa [#allocation3], 0  ;;  %s1077_s0 = inlined_call_operand.hbm [shape: f32[4,8,32], index: 0, kind: input, shape index: {}]   ;;  %s1078_s1 = inlined_call_operand.hbm [shape: f32[4,32,32], index: 1, kind: input, shape index: {}]   ;;  %s1079_s2 = inlined_call_operand.hbm [shape: f32[4,8,32], index: 2, kind: input, shape index: {}]   ;;  %s1080_s3 = inlined_call_operand.vmem [shape: f32[4,32], index: 3, kind: input, shape index: {}]   ;;  %s1081_s4 = inlined_call_operand.hbm [shape: f32[4,256], index: 4, kind: output, shape index: {}]  }
   0x1   :  { %10 = vsyncpa [#allocation6], 0 }
   0x2   :  { %11 = vsyncpa [#allocation4], 0  ;;  %s793_s15 = smov [#allocation5]   ;;  %s794_s17 = smov [#allocation2]  }
   0x3   :  { %s29_s16 = sshll.u32 %s793_s15, 4  ;;  %s17_s18 = sshll.u32 %s794_s17, 4  ;;  %s30_s16 = int_to_ptr.vmem [resolvable:$true] %s29_s16  ;;  %s830_s18 = int_to_ptr.vmem [resolvable:$true] %s17_s18 }
   0x4   :  { %s699_s21 = scalar_lea.hbm %s1078_s1, 2048 }
   0x5   :  { %p700_p0 = scmp.ne.s32.totalorder %s1078_s1, %s699_s21  ;;  %p703_p1 = scmp.lt.u32.totalorder %s699_s21, %s1078_s1 }
   0x7   :  { %p705_p2 = pnand %p703_p1, %p700_p0 }
   0x9   :  { %708 = shalt.err (!%p705_p2)
}
   0xa   :  { %s709_s26 = scalar_lea.vmem %s30_s16, 2048  ;;  %p714_p4 = scmp.lt.s32.totalorder %s30_s16, %s30_s16 }
   0xb   :  { %p710_p3 = scmp.ne.s32.totalorder %s30_s16, %s709_s26  ;;  %p715_p5 = scmp.lt.s32.totalorder %s709_s26, %s709_s26 }
   0xd   :  { %p716_p6 = por %p715_p5, %p714_p4 }
   0xf   :  { %p717_p7 = pnand %p716_p6, %p710_p3 }
  0x11   :  { %720 = shalt.err (!%p717_p7)
}
  0x12   :  { %s795_s27 = smov 128   ;;  %s796_s28 = smov 8  }
  0x13   :  { %35 = dma.hbm_to_vmem [thread:$0]  %s1078_s1, 2048, %s30_s16, [#allocation6], %s795_s27, %s795_s27, %s796_s28  }
  0x14   :  { %s721_s7 = scalar_lea.hbm %s1077_s0, 512 }
  0x15   :  { %p722_p8 = scmp.ne.s32.totalorder %s1077_s0, %s721_s7  ;;  %p725_p9 = scmp.lt.u32.totalorder %s721_s7, %s1077_s0 }
  0x17   :  { %p727_p10 = pnand %p725_p9, %p722_p8 }
  0x19   :  { %730 = shalt.err (!%p727_p10)
}
  0x1a   :  { %s731_s12 = scalar_lea.vmem %s830_s18, 512  ;;  %p736_p12 = scmp.lt.s32.totalorder %s830_s18, %s830_s18 }
  0x1b   :  { %p732_p11 = scmp.ne.s32.totalorder %s830_s18, %s731_s12  ;;  %p737_p13 = scmp.lt.s32.totalorder %s731_s12, %s731_s12 }
  0x1d   :  { %p738_p0 = por %p737_p13, %p736_p12 }
  0x1f   :  { %p739_p1 = pnand %p738_p0, %p732_p11 }
  0x21   :  { %742 = shalt.err (!%p739_p1)
}
  0x22   :  { %23 = dma.hbm_to_vmem [thread:$0]  %s1077_s0, 512, %s830_s18, [#allocation3], %s795_s27, %s795_s27, %s796_s28  }
  0x23   :  { %s797_s14 = smov [#allocation7]   ;;  %s743_s19 = scalar_lea.hbm %s1079_s2, 512 }
  0x24   :  { %s41_s15 = sshll.u32 %s797_s14, 4  ;;  %p744_p2 = scmp.ne.s32.totalorder %s1079_s2, %s743_s19  ;;  %s42_s15 = int_to_ptr.vmem [resolvable:$true] %s41_s15 }
  0x25   :  { %p747_p3 = scmp.lt.u32.totalorder %s743_s19, %s1079_s2 }
  0x27   :  { %p749_p4 = pnand %p747_p3, %p744_p2 }
  0x29   :  { %752 = shalt.err (!%p749_p4)
}
  0x2a   :  { %s753_s24 = scalar_lea.vmem %s42_s15, 512  ;;  %p758_p6 = scmp.lt.s32.totalorder %s42_s15, %s42_s15 }
  0x2b   :  { %p754_p5 = scmp.ne.s32.totalorder %s42_s15, %s753_s24  ;;  %p759_p7 = scmp.lt.s32.totalorder %s753_s24, %s753_s24 }
  0x2d   :  { %p760_p8 = por %p759_p7, %p758_p6 }
  0x2f   :  { %p761_p9 = pnand %p760_p8, %p754_p5 }
  0x31   :  { %764 = shalt.err (!%p761_p9)
}
  0x32   :  { %47 = dma.hbm_to_vmem [thread:$0]  %s1079_s2, 512, %s42_s15, [#allocation6], %s795_s27, %s795_s27, %s796_s28  }
  0x33   :  { %787 = dma.done.wait [#allocation3], 512  }
  0x34   :  { %788 = vsyncadd [#allocation3], 4294966784 }
  0x35   :  { %789 = dma.done.wait [#allocation6], 2560  }
  0x36   :  { %790 = vsyncadd [#allocation6], 4294964736  ;;  %vm64_vm0 = vcmask 261120   ;;  %v60_v0 = vld [vmem:[#allocation2 + $0x8] sm:$0xff]  ;;  %v62_v1 = vld [vmem:[#allocation2 + $0x18] sm:$0xff]  ;;  %s798_s2 = smov 32   ;;  %v118_v40 = vlaneseq }
  0x37   :  { %v61_v2 = vld [vmem:[#allocation2 + $0x10] sm:$0xff]  ;;  %v68_v3 = vsel %vm64_vm0, %v60_v0, 0.0  ;;  %v74_v4 = vsel %vm64_vm0, %v62_v1, 0.0  ;;  %v884_v5 = vld [vmem:[#allocation2] sm:$0xff]  ;;  %v141_v24 = vld [vmem:[#allocation5 + $0x38] sm:$0xff]  ;;  %s799_s25 = smov 64  }
  0x38   :  { %69 = vadd.xlane.f32.xlu0 %v68_v3  ;;  %75 = vadd.xlane.f32.xlu1 %v74_v4  ;;  %v71_v6 = vsel %vm64_vm0, %v61_v2, 0.0  ;;  %v65_v7 = vsel %vm64_vm0, %v884_v5, 0.0  ;;  %v140_v23 = vld [vmem:[#allocation5 + $0x30] sm:$0xff]  ;;  %v142_v26 = vld [vmem:[#allocation5 + $0x40] sm:$0xff]  ;;  %v143_v27 = vld [vmem:[#allocation5 + $0x48] sm:$0xff]  ;;  %s800_s26 = smov 96  }
  0x39   :  { %v650_v25 = vpack.i.bf16 %v141_v24, %v140_v23  ;;  %v138_v28 = vld [vmem:[#allocation5 + $0x20] sm:$0xff]  ;;  %v139_v29 = vld [vmem:[#allocation5 + $0x28] sm:$0xff]  ;;  %v655_v30 = vpack.i.bf16 %v143_v27, %v142_v26  ;;  %v144_v31 = vld [vmem:[#allocation5 + $0x50] sm:$0xff]  ;;  %v909_v42 = vshrl.u32 %v118_v40, 7  ;;  %v801_v50 = vmov 0.0|0.0  }
  0x3a   :  { %v145_v32 = vld [vmem:[#allocation5 + $0x58] sm:$0xff]  ;;  %v645_v33 = vpack.i.bf16 %v139_v29, %v138_v28  ;;  %v146_v34 = vld [vmem:[#allocation5 + $0x60] sm:$0xff]  ;;  %v147_v35 = vld [vmem:[#allocation5 + $0x68] sm:$0xff]  ;;  %601 = vmatprep.subr.bf16.mxu0 %v801_v50  ;;  %vm174_vm2 = vcmask 523264   ;;  %vm802_vm4 = vmmov 0   ;;  %vm199_vm5 = vcmask 785408  }
  0x3b   :  { %v660_v36 = vpack.i.bf16 %v145_v32, %v144_v31  ;;  %v148_v37 = vld [vmem:[#allocation5 + $0x70] sm:$0xff]  ;;  %v149_v38 = vld [vmem:[#allocation5 + $0x78] sm:$0xff]  ;;  %v665_v39 = vpack.i.bf16 %v147_v35, %v146_v34  ;;  %v381_v43 = vsub.s32 2, %v909_v42  ;;  %v389_v44 = vsub.s32 3, %v909_v42  ;;  %v917_v45 = vld [vmem:[%s1080_s3] sm:$0xf] }
  0x3c   :  { %72 = vadd.xlane.f32.xlu0 %v71_v6  ;;  %66 = vadd.xlane.f32.xlu1 %v65_v7  ;;  %v670_v41 = vpack.i.bf16 %v149_v38, %v148_v37  ;;  %v134_v48 = vld [vmem:[#allocation5] sm:$0xff]  ;;  %v135_v49 = vld [vmem:[#allocation5 + $0x8] sm:$0xff]  ;;  %vm603_vm1 = vmpackc.low %vm64_vm0, %vm64_vm0  ;;  %vm428_vm9 = vcmask 1041409   ;;  %vm431_vm10 = vcmask 1042434   ;;  %vm434_vm11 = vcmask 1043459   ;;  %s804_s3 = smov [#allocation8]  }
  0x3d   :  { %v920_v46 = vrot.slane %v917_v45, %v381_v43  ;;  %v923_v47 = vrot.slane %v917_v45, %v389_v44  ;;  %v602_v51 = vpack.c.bf16 %v135_v49, %v134_v48  ;;  %v136_v52 = vld [vmem:[#allocation5 + $0x10] sm:$0xff]  ;;  %v137_v53 = vld [vmem:[#allocation5 + $0x18] sm:$0xff]  ;;  %vm942_vm3 = vmpackc.low %vm174_vm2, %vm174_vm2  ;;  %s519_s29 = sshll.u32 %s804_s3, 4  ;;  %s520_s29 = int_to_ptr.vmem [resolvable:$true] %s519_s29 }
  0x3e   :  { %v606_v54 = vpack.c.bf16 %v137_v53, %v136_v52  ;;  %vm963_vm6 = vmpackc.low %vm199_vm5, %vm199_vm5  ;;  %s765_s30 = scalar_lea.vmem %s520_s29, 128  ;;  %p770_p11 = scmp.lt.s32.totalorder %s520_s29, %s520_s29 }
  0x3f   :  { %604 = vmatpush3.bf16.msk.msra.mxu0 %vm603_vm1, %v602_v51  ;;  %vm541_vm7 = vmneg %vm199_vm5  ;;  %p766_p10 = scmp.ne.s32.totalorder %s520_s29, %s765_s30  ;;  %p771_p12 = scmp.lt.s32.totalorder %s765_s30, %s765_s30 }
  0x40   :  { %605 = vmatprep.subr.bf16.mxu0 %v801_v50  ;;  %vm627_vm8 = vmpackc.low %vm541_vm7, %vm541_vm7 }
  0x41   :  { %p772_p13 = por %p771_p12, %p770_p11 }
  0x43   :  { %608 = vmatpush3.bf16.msk.msra.mxu0 %vm603_vm1, %v606_v54  ;;  %p773_p0 = pnand %p772_p13, %p766_p10 }
  0x44   :  { %609 = vmatprep.subr.bf16.mxu0 %v801_v50 }
  0xc5   :  { %v70_v8 = vpop.xlane.xlu0 %69  ;;  %v76_v9 = vpop.xlane.xlu1 %75 }
  0xc6   :  { %v79_v10 = vmul.f32 0.03125, %v70_v8  ;;  %v81_v11 = vmul.f32 0.03125, %v76_v9 }
  0xc8   :  { %v889_v12 = vsub.f32 %v60_v0, %v79_v10  ;;  %v891_v13 = vsub.f32 %v62_v1, %v81_v11  ;;  %v120_v10 = vsub.s32 0, %v909_v42 }
  0xc9   :  { %v73_v14 = vpop.xlane.xlu0 %72  ;;  %v67_v55 = vpop.xlane.xlu1 %66 }
  0xca   :  { %v80_v15 = vmul.f32 0.03125, %v73_v14  ;;  %v87_v16 = vmul.f32 %v889_v12, %v889_v12  ;;  %v89_v17 = vmul.f32 %v891_v13, %v891_v13  ;;  %v78_v56 = vmul.f32 0.03125, %v67_v55 }
  0xcc   :  { %v897_v18 = vsub.f32 %v61_v2, %v80_v15  ;;  %v93_v19 = vsel %vm64_vm0, %v87_v16, 0.0  ;;  %v99_v20 = vsel %vm64_vm0, %v89_v17, 0.0  ;;  %v931_v57 = vsub.f32 %v884_v5, %v78_v56 }
  0xcd   :  { %94 = vadd.xlane.f32.xlu0 %v93_v19  ;;  %v128_v19 = vsub.s32 1, %v909_v42 }
  0xce   :  { %v88_v21 = vmul.f32 %v897_v18, %v897_v18  ;;  %v86_v58 = vmul.f32 %v931_v57, %v931_v57 }
  0xcf   :  { %v129_v32 = vrot.slane %v917_v45, %v128_v19 }
  0xd0   :  { %v96_v22 = vsel %vm64_vm0, %v88_v21, 0.0  ;;  %v90_v59 = vsel %vm64_vm0, %v86_v58, 0.0 }
  0xd1   :  { %100 = vadd.xlane.f32.xlu0 %v99_v20  ;;  %97 = vadd.xlane.f32.xlu1 %v96_v22 }
  0xe2   :  { %651 = vrot.lane.b32.xlu1 %v650_v25, %s798_s2  ;;  %v121_v25 = vrot.slane %v917_v45, %v120_v10 }
  0xe6   :  { %656 = vrot.lane.b32.xlu1 %v655_v30, %s799_s25  ;;  %v803_v30 = vmov 0.0  }
  0xe7   :  { %646 = vrot.lane.b32.xlu0 %v645_v33, %s798_s2  ;;  %598 = vmatprep.mubr.msk.f32.mxu0 %vm802_vm4, %v803_v30 }
  0xea   :  { %661 = vrot.lane.b32.xlu1 %v660_v36, %s799_s25 }
  0xeb   :  { %666 = vrot.lane.b32.xlu0 %v665_v39, %s800_s26 }
  0xee   :  { %671 = vrot.lane.b32.xlu1 %v670_v41, %s800_s26 }
 0x112   :  { %91 = vadd.xlane.f32.xlu1 %v90_v59 }
 0x15a   :  { %v95_v60 = vpop.xlane.xlu0 %94 }
 0x15b   :  { %v103_v61 = vmul.f32 0.03125, %v95_v60 }
 0x15d   :  { %v107_v62 = vadd.f32 1e-05, %v103_v61 }
 0x15e   :  { %v101_v63 = vpop.xlane.xlu0 %100  ;;  %v98_v0 = vpop.xlane.xlu1 %97 }
 0x15f   :  { %675 = vrsqrt.f32 %v107_v62  ;;  %v105_v1 = vmul.f32 0.03125, %v101_v63  ;;  %v104_v2 = vmul.f32 0.03125, %v98_v0 }
 0x161   :  { %v109_v3 = vadd.f32 1e-05, %v105_v1  ;;  %v108_v4 = vadd.f32 1e-05, %v104_v2 }
 0x162   :  { %v647_v6 = vpop.permute.xlu0 %646  ;;  %v652_v7 = vpop.permute.xlu1 %651 }
 0x163   :  { %677 = vrsqrt.f32 %v109_v3  ;;  %v649_v5 = vunpack.i.h.bf16 %v647_v6  ;;  %v648_v8 = vunpack.i.l.bf16 %v647_v6  ;;  %v654_v9 = vunpack.i.h.bf16 %v652_v7 }
 0x164   :  { %679 = vrsqrt.f32 %v108_v4  ;;  %v653_v11 = vunpack.i.l.bf16 %v652_v7 }
 0x165   :  { %v171_v14 = vsel %vm64_vm0, 0.0, %v649_v5  ;;  %v170_v15 = vsel %vm64_vm0, 0.0, %v648_v8  ;;  %v173_v16 = vsel %vm64_vm0, 0.0, %v654_v9  ;;  %v319_v9 = vld [vmem:[#allocation7] sm:$0xff] }
 0x166   :  { %v610_v20 = vpack.c.bf16 %v171_v14, %v170_v15  ;;  %v172_v21 = vsel %vm64_vm0, 0.0, %v653_v11  ;;  %v657_v22 = vpop.permute.xlu1 %656  ;;  %v667_v41 = vpop.permute.xlu0 %666  ;;  %v321_v14 = vld [vmem:[#allocation7 + $0x10] sm:$0xff]  ;;  %v320_v15 = vld [vmem:[#allocation7 + $0x8] sm:$0xff] }
 0x167   :  { %v659_v23 = vunpack.i.h.bf16 %v657_v22  ;;  %v658_v24 = vunpack.i.l.bf16 %v657_v22  ;;  %v614_v26 = vpack.c.bf16 %v173_v16, %v172_v21  ;;  %v669_v51 = vunpack.i.h.bf16 %v667_v41  ;;  %v322_v21 = vld [vmem:[#allocation7 + $0x18] sm:$0xff] }
 0x168   :  { %612 = vmatpush3.bf16.msk.msra.mxu0 %vm942_vm3, %v610_v20  ;;  %v668_v52 = vunpack.i.l.bf16 %v667_v41 }
 0x169   :  { %v676_v27 = vpop.eup %675  ;;  %v196_v28 = vsel %vm174_vm2, 0.0, %v659_v23  ;;  %v195_v29 = vsel %vm174_vm2, 0.0, %v658_v24  ;;  %613 = vmatprep.subr.bf16.mxu0 %v801_v50 }
 0x16a   :  { %v115_v31 = vmul.f32 %v676_v27, %v889_v12  ;;  %v662_v33 = vpop.permute.xlu1 %661  ;;  %v618_v37 = vpack.c.bf16 %v196_v28, %v195_v29 }
 0x16b   :  { %v664_v34 = vunpack.i.h.bf16 %v662_v33  ;;  %v663_v35 = vunpack.i.l.bf16 %v662_v33 }
 0x16c   :  { %v123_v36 = vmul.f32 %v121_v25, %v115_v31  ;;  %616 = vmatpush3.bf16.msk.msra.mxu0 %vm942_vm3, %v614_v26 }
 0x16d   :  { %v678_v38 = vpop.eup %677  ;;  %v198_v39 = vsel %vm174_vm2, 0.0, %v664_v34  ;;  %v197_v40 = vsel %vm174_vm2, 0.0, %v663_v35  ;;  %617 = vmatprep.subr.bf16.mxu0 %v801_v50 }
 0x16e   :  { %v680_v42 = vpop.eup %679  ;;  %v967_v43 = vadd.f32 %v129_v32, %v123_v36  ;;  %v117_v44 = vmul.f32 %v678_v38, %v891_v13  ;;  %v622_v49 = vpack.c.bf16 %v198_v39, %v197_v40  ;;  %v672_v54 = vpop.permute.xlu1 %671 }
 0x16f   :  { %v116_v45 = vmul.f32 %v680_v42, %v897_v18  ;;  %v626_v18 = vpack.c.bf16 %v669_v51, %v668_v52  ;;  %v674_v56 = vunpack.i.h.bf16 %v672_v54  ;;  %v673_v58 = vunpack.i.l.bf16 %v672_v54 }
 0x170   :  { %225 = vrot.lane.b32.xlu0 %v967_v43, %s798_s2  ;;  %v125_v48 = vmul.f32 %v121_v25, %v117_v44  ;;  %620 = vmatpush3.bf16.msk.msra.mxu0 %vm963_vm6, %v618_v37 }
 0x171   :  { %v124_v53 = vmul.f32 %v121_v25, %v116_v45  ;;  %621 = vmatprep.subr.bf16.mxu0 %v801_v50  ;;  %v630_v59 = vpack.c.bf16 %v674_v56, %v673_v58 }
 0x172   :  { %v976_v55 = vadd.f32 %v129_v32, %v125_v48 }
 0x173   :  { %v979_v13 = vadd.f32 %v129_v32, %v124_v53 }
 0x174   :  { %233 = vrot.lane.b32.xlu0 %v976_v55, %s800_s26  ;;  %624 = vmatpush3.bf16.msk.msra.mxu0 %vm963_vm6, %v622_v49 }
 0x175   :  { %229 = vrot.lane.b32.xlu1 %v979_v13, %s799_s25  ;;  %625 = vmatprep.subr.bf16.mxu0 %v801_v50 }
 0x178   :  { %628 = vmatpush3.bf16.msk.msra.mxu0 %vm627_vm8, %v626_v18 }
 0x179   :  { %629 = vmatprep.subr.bf16.mxu0 %v801_v50 }
 0x17c   :  { %632 = vmatpush3.bf16.msk.msra.mxu0 %vm627_vm8, %v630_v59 }
 0x19f   :  { %v92_v60 = vpop.xlane.xlu1 %91 }
 0x1a0   :  { %v102_v61 = vmul.f32 0.03125, %v92_v60 }
 0x1a2   :  { %v106_v62 = vadd.f32 1e-05, %v102_v61 }
 0x1a4   :  { %681 = vrsqrt.f32 %v106_v62 }
 0x1ae   :  { %v682_v63 = vpop.eup %681 }
 0x1af   :  { %v114_v0 = vmul.f32 %v682_v63, %v931_v57 }
 0x1b1   :  { %v122_v1 = vmul.f32 %v121_v25, %v114_v0 }
 0x1b3   :  { %v990_v3 = vadd.f32 %v129_v32, %v122_v1 }
 0x1e2   :  { %v226_v2 = vpop.permute.xlu0 %225 }
 0x1e3   :  { %v236_v6 = vsel %vm64_vm0, %v990_v3, %v226_v2 }
 0x1e6   :  { %v234_v4 = vpop.permute.xlu0 %233 }
 0x1e7   :  { %v230_v7 = vpop.permute.xlu1 %229 }
 0x1e8   :  { %v237_v5 = vsel %vm174_vm2, %v236_v6, %v230_v7 }
 0x1e9   :  { %v238_v50 = vsel %vm199_vm5, %v237_v5, %v234_v4 }
 0x1ea   :  { %599 = vmatmul.mubr.f32.vlgmr.msra.gmra.mrb[0].mxu0 %v238_v50 }
 0x2bd   :  { %v305_v8 = vpop.f32.mrb[0].mxu0 }
 0x2be   :  { %313 = vrot.lane.b32.xlu0 %v305_v8, %s799_s25  ;;  %310 = vrot.lane.b32.xlu1 %v305_v8, %s800_s26  ;;  %v600_v57 = vpop.f32.mrb[1].mxu0  ;;  %v323_v10 = vadd.f32 %v319_v9, %v305_v8 }
 0x2c0   :  { %v327_v11 = vsel %vm64_vm0, %v323_v10, 0.0 }
 0x2c2   :  { %316 = vrot.lane.b32.xlu1 %v305_v8, %s798_s2 }
 0x2dd   :  { %328 = vadd.xlane.f32.xlu0 %v327_v11 }
 0x330   :  { %v314_v16 = vpop.permute.xlu0 %313  ;;  %v311_v17 = vpop.permute.xlu1 %310 }
 0x331   :  { %v325_v19 = vadd.f32 %v321_v14, %v314_v16  ;;  %v324_v20 = vadd.f32 %v320_v15, %v311_v17 }
 0x333   :  { %v330_v22 = vsel %vm64_vm0, %v324_v20, 0.0  ;;  %v333_v23 = vsel %vm64_vm0, %v325_v19, 0.0 }
 0x334   :  { %331 = vadd.xlane.f32.xlu1 %v330_v22  ;;  %v317_v24 = vpop.permute.xlu1 %316  ;;  %334 = vadd.xlane.f32.xlu0 %v333_v23 }
 0x335   :  { %v326_v25 = vadd.f32 %v322_v21, %v317_v24 }
 0x337   :  { %v336_v26 = vsel %vm64_vm0, %v326_v25, 0.0 }
 0x338   :  { %337 = vadd.xlane.f32.xlu0 %v336_v26 }
 0x36a   :  { %v329_v27 = vpop.xlane.xlu0 %328 }
 0x36b   :  { %v339_v28 = vmul.f32 0.03125, %v329_v27 }
 0x36d   :  { %v343_v29 = vsub.f32 %v323_v10, %v339_v28 }
 0x36f   :  { %v347_v30 = vmul.f32 %v343_v29, %v343_v29 }
 0x371   :  { %v351_v31 = vsel %vm64_vm0, %v347_v30, 0.0 }
 0x372   :  { %352 = vadd.xlane.f32.xlu0 %v351_v31 }
 0x3c1   :  { %v332_v32 = vpop.xlane.xlu1 %331  ;;  %v335_v33 = vpop.xlane.xlu0 %334 }
 0x3c2   :  { %v340_v34 = vmul.f32 0.03125, %v332_v32  ;;  %v341_v35 = vmul.f32 0.03125, %v335_v33 }
 0x3c4   :  { %v344_v36 = vsub.f32 %v324_v20, %v340_v34  ;;  %v345_v37 = vsub.f32 %v325_v19, %v341_v35 }
 0x3c5   :  { %v338_v38 = vpop.xlane.xlu0 %337 }
 0x3c6   :  { %v342_v39 = vmul.f32 0.03125, %v338_v38  ;;  %v348_v40 = vmul.f32 %v344_v36, %v344_v36  ;;  %v349_v12 = vmul.f32 %v345_v37, %v345_v37 }
 0x3c8   :  { %v346_v41 = vsub.f32 %v326_v25, %v342_v39  ;;  %v354_v42 = vsel %vm64_vm0, %v348_v40, 0.0  ;;  %v357_v44 = vsel %vm64_vm0, %v349_v12, 0.0 }
 0x3c9   :  { %355 = vadd.xlane.f32.xlu1 %v354_v42  ;;  %358 = vadd.xlane.f32.xlu0 %v357_v44 }
 0x3ca   :  { %v350_v45 = vmul.f32 %v346_v41, %v346_v41 }
 0x3cc   :  { %v360_v48 = vsel %vm64_vm0, %v350_v45, 0.0 }
 0x3cd   :  { %361 = vadd.xlane.f32.xlu1 %v360_v48 }
 0x3ff   :  { %v353_v49 = vpop.xlane.xlu0 %352 }
 0x400   :  { %v363_v51 = vmul.f32 0.03125, %v353_v49 }
 0x402   :  { %v367_v52 = vadd.f32 1e-05, %v363_v51 }
 0x404   :  { %683 = vrsqrt.f32 %v367_v52 }
 0x40e   :  { %v684_v53 = vpop.eup %683 }
 0x40f   :  { %v375_v54 = vmul.f32 %v684_v53, %v343_v29 }
 0x411   :  { %v383_v18 = vmul.f32 %v920_v46, %v375_v54 }
 0x413   :  { %v391_v56 = vadd.f32 %v923_v47, %v383_v18 }
 0x415   :  { %v399_v2 = vmul.f32 0.70710677, %v391_v56  ;;  %v395_v22 = vmul.f32 0.5, %v391_v56 }
 0x456   :  { %v356_v58 = vpop.xlane.xlu1 %355  ;;  %v359_v59 = vpop.xlane.xlu0 %358 }
 0x457   :  { %v364_v60 = vmul.f32 0.03125, %v356_v58  ;;  %v365_v61 = vmul.f32 0.03125, %v359_v59 }
 0x459   :  { %v368_v62 = vadd.f32 1e-05, %v364_v60  ;;  %v369_v63 = vadd.f32 1e-05, %v365_v61 }
 0x45a   :  { %v362_v0 = vpop.xlane.xlu1 %361 }
 0x45b   :  { %685 = vrsqrt.f32 %v368_v62  ;;  %v366_v1 = vmul.f32 0.03125, %v362_v0 }
 0x45c   :  { %687 = vrsqrt.f32 %v369_v63 }
 0x45d   :  { %v370_v4 = vadd.f32 1e-05, %v366_v1 }
 0x45f   :  { %689 = vrsqrt.f32 %v370_v4 }
 0x460   :  { %691 = verf.f32 %v399_v2 }
 0x465   :  { %v686_v6 = vpop.eup %685 }
 0x466   :  { %v688_v7 = vpop.eup %687  ;;  %v376_v5 = vmul.f32 %v686_v6, %v344_v36 }
 0x467   :  { %v377_v50 = vmul.f32 %v688_v7, %v345_v37 }
 0x468   :  { %v384_v8 = vmul.f32 %v920_v46, %v376_v5 }
 0x469   :  { %v690_v57 = vpop.eup %689  ;;  %v385_v9 = vmul.f32 %v920_v46, %v377_v50 }
 0x46a   :  { %v392_v10 = vadd.f32 %v923_v47, %v384_v8  ;;  %v378_v11 = vmul.f32 %v690_v57, %v346_v41  ;;  %v692_v14 = vpop.eup %691 }
 0x46b   :  { %v393_v15 = vadd.f32 %v923_v47, %v385_v9  ;;  %v407_v20 = vadd.f32 1.0, %v692_v14 }
 0x46c   :  { %v400_v16 = vmul.f32 0.70710677, %v392_v10  ;;  %v386_v17 = vmul.f32 %v920_v46, %v378_v11  ;;  %v396_v28 = vmul.f32 0.5, %v392_v10 }
 0x46d   :  { %v401_v19 = vmul.f32 0.70710677, %v393_v15  ;;  %v411_v24 = vmul.f32 %v407_v20, %v395_v22  ;;  %v397_v31 = vmul.f32 0.5, %v393_v15 }
 0x46e   :  { %693 = verf.f32 %v400_v16  ;;  %v394_v21 = vadd.f32 %v923_v47, %v386_v17 }
 0x46f   :  { %695 = verf.f32 %v401_v19  ;;  %v415_v25 = vadd.f32 %v411_v24, %v990_v3 }
 0x470   :  { %v402_v23 = vmul.f32 0.70710677, %v394_v21  ;;  %v398_v35 = vmul.f32 0.5, %v394_v21 }
 0x471   :  { %v1016_v30 = vmul.f32 0.5, %v415_v25 }
 0x472   :  { %697 = verf.f32 %v402_v23 }
 0x473   :  { %v472_v3 = vrot.slane %v1016_v30, 5  ;;  %v437_v38 = vrot.slane %v1016_v30, 1  ;;  %v446_v12 = vrot.slane %v1016_v30, 2  ;;  %v455_v41 = vrot.slane %v1016_v30, 3 }
 0x474   :  { %v482_v44 = vrot.slane %v1016_v30, 6  ;;  %v464_v45 = vrot.slane %v1016_v30, 4 }
 0x478   :  { %v694_v26 = vpop.eup %693 }
 0x479   :  { %v696_v27 = vpop.eup %695  ;;  %v408_v29 = vadd.f32 1.0, %v694_v26 }
 0x47a   :  { %v409_v46 = vadd.f32 1.0, %v696_v27 }
 0x47b   :  { %v412_v32 = vmul.f32 %v408_v29, %v396_v28 }
 0x47c   :  { %v698_v33 = vpop.eup %697  ;;  %v413_v34 = vmul.f32 %v409_v46, %v397_v31 }
 0x47d   :  { %v416_v47 = vadd.f32 %v412_v32, %v967_v43  ;;  %v410_v36 = vadd.f32 1.0, %v698_v33  ;;  %v492_v43 = vrot.slane %v1016_v30, 7 }
 0x47e   :  { %v417_v37 = vadd.f32 %v413_v34, %v979_v13 }
 0x47f   :  { %v420_v39 = vmul.f32 0.5, %v416_v47  ;;  %v414_v40 = vmul.f32 %v410_v36, %v398_v35 }
 0x480   :  { %v421_v42 = vmul.f32 0.5, %v417_v37 }
 0x481   :  { %v418_v13 = vadd.f32 %v414_v40, %v976_v55  ;;  %v473_v48 = vrot.slane %v420_v39, 4  ;;  %v438_v49 = vsel %vm428_vm9, %v420_v39, %v437_v38  ;;  %v447_v51 = vrot.slane %v420_v39, 1 }
 0x482   :  { %v475_v52 = vrot.slane %v421_v42, 3  ;;  %v439_v53 = vrot.slane %v421_v42, 7  ;;  %v456_v54 = vrot.slane %v420_v39, 2  ;;  %v458_v18 = vrot.slane %v421_v42, 1 }
 0x483   :  { %v422_v56 = vmul.f32 0.5, %v418_v13  ;;  %v474_v58 = vsel %vm428_vm9, %v473_v48, %v472_v3  ;;  %v448_v59 = vsel %vm428_vm9, %v447_v51, %v446_v12  ;;  %v483_v60 = vrot.slane %v420_v39, 5 }
 0x484   :  { %v476_v61 = vsel %vm431_vm10, %v475_v52, %v474_v58  ;;  %v440_v62 = vsel %vm431_vm10, %v439_v53, %v438_v49  ;;  %v449_v55 = vsel %vm431_vm10, %v421_v42, %v448_v59  ;;  %v457_v63 = vsel %vm428_vm9, %v456_v54, %v455_v41 }
 0x485   :  { %v477_v0 = vrot.slane %v422_v56, 2  ;;  %v441_v1 = vrot.slane %v422_v56, 6  ;;  %v450_v2 = vrot.slane %v422_v56, 7  ;;  %v459_v4 = vsel %vm431_vm10, %v458_v18, %v457_v63 }
 0x486   :  { %v460_v6 = vsel %vm434_vm11, %v422_v56, %v459_v4  ;;  %v484_v7 = vsel %vm428_vm9, %v483_v60, %v482_v44  ;;  %v485_v5 = vrot.slane %v421_v42, 4  ;;  %v487_v50 = vrot.slane %v422_v56, 3 }
 0x487   :  { %v478_v8 = vsel %vm434_vm11, %v477_v0, %v476_v61  ;;  %v442_v57 = vsel %vm434_vm11, %v441_v1, %v440_v62  ;;  %v451_v9 = vsel %vm434_vm11, %v450_v2, %v449_v55  ;;  %v493_v10 = vrot.slane %v420_v39, 6 }
 0x488   :  { %479 = vrot.lane.b32.xlu1 %v478_v8, %s798_s2  ;;  %443 = vrot.lane.b32.xlu0 %v442_v57, %s798_s2  ;;  %v486_v11 = vsel %vm431_vm10, %v485_v5, %v484_v7  ;;  %v495_v14 = vrot.slane %v421_v42, 5  ;;  %v497_v15 = vrot.slane %v422_v56, 4  ;;  %v465_v16 = vrot.slane %v420_v39, 3 }
 0x489   :  { %v488_v17 = vsel %vm434_vm11, %v487_v50, %v486_v11  ;;  %v494_v19 = vsel %vm428_vm9, %v493_v10, %v492_v43  ;;  %v469_v20 = vrot.slane %v422_v56, 1  ;;  %v467_v21 = vrot.slane %v421_v42, 2 }
 0x48a   :  { %v496_v22 = vsel %vm431_vm10, %v495_v14, %v494_v19  ;;  %v466_v23 = vsel %vm428_vm9, %v465_v16, %v464_v45  ;;  %v427_v24 = vrot.slane %v420_v39, 7  ;;  %v433_v25 = vrot.slane %v422_v56, 5 }
 0x48b   :  { %v498_v26 = vsel %vm434_vm11, %v497_v15, %v496_v22  ;;  %v468_v27 = vsel %vm431_vm10, %v467_v21, %v466_v23  ;;  %v430_v28 = vrot.slane %v421_v42, 6 }
 0x48c   :  { %452 = vrot.lane.b32.xlu1 %v451_v9, %s799_s25  ;;  %461 = vrot.lane.b32.xlu0 %v460_v6, %s800_s26  ;;  %v470_v29 = vsel %vm434_vm11, %v469_v20, %v468_v27  ;;  %v429_v31 = vsel %vm428_vm9, %v427_v24, %v1016_v30 }
 0x48d   :  { %v432_v46 = vsel %vm431_vm10, %v430_v28, %v429_v31 }
 0x48e   :  { %v435_v32 = vsel %vm434_vm11, %v433_v25, %v432_v46 }
 0x490   :  { %489 = vrot.lane.b32.xlu1 %v488_v17, %s799_s25 }
 0x494   :  { %499 = vrot.lane.b32.xlu1 %v498_v26, %s800_s26 }
 0x4fa   :  { %v480_v33 = vpop.permute.xlu1 %479  ;;  %v444_v34 = vpop.permute.xlu0 %443 }
 0x4fb   :  { %v502_v36 = vsel %vm64_vm0, %v435_v32, %v444_v34  ;;  %v505_v38 = vsel %vm64_vm0, %v470_v29, %v480_v33 }
 0x4fe   :  { %v453_v47 = vpop.permute.xlu1 %452  ;;  %v462_v3 = vpop.permute.xlu0 %461 }
 0x4ff   :  { %v503_v37 = vsel %vm174_vm2, %v502_v36, %v453_v47 }
 0x500   :  { %v504_v40 = vsel %vm199_vm5, %v503_v37, %v462_v3 }
 0x502   :  { %v490_v35 = vpop.permute.xlu1 %489 }
 0x503   :  { %v506_v30 = vsel %vm174_vm2, %v505_v38, %v490_v35 }
 0x506   :  { %v500_v39 = vpop.permute.xlu1 %499 }
 0x507   :  { %v507_v12 = vsel %vm199_vm5, %v506_v30, %v500_v39 }
 0x508   :  { %v510_v41 = vcombine.low %v504_v40, %v507_v12 }
 0x50a   :  { %512 = vst [vmem:[#allocation8] sm:$0xff] %v510_v41 }
 0x50b   :  { %776 = shalt.err (!%p773_p0)
}
 0x50c   :  { %s777_s7 = scalar_lea.hbm %s1081_s4, 128 }
 0x50d   :  { %p778_p1 = scmp.ne.s32.totalorder %s1081_s4, %s777_s7  ;;  %p781_p2 = scmp.lt.u32.totalorder %s777_s7, %s1081_s4 }
 0x50f   :  { %p783_p3 = pnand %p781_p2, %p778_p1 }
 0x511   :  { %786 = shalt.err (!%p783_p3)
}
 0x512   :  { %522 = dma.vmem_to_hbm [thread:$0]  %s520_s29, 128, %s1081_s4, [#allocation4]  }
 0x513   :  { %791 = dma.done.wait [#allocation4], 128  }
 0x514   :  { %792 = vsyncadd [#allocation4], 4294967168 }
 0x515   :  { %526 = vsyncpa [#allocation3], 1 }
 0x516   :  { %527 = vsyncpa [#allocation6], 1 }
 0x517   :  { %528 = vsyncpa [#allocation4], 1 }

</bundles_post_ra>
